<compile_context>
chip_gen: v7x
topology: tpu7x:2x2x1
jax: 0.10.0
libtpu: 0.0.40
codegen_flags: <defaults>
</compile_context>

<pallas_src>
import math
from functools import partial

import jax
import jax.numpy as jnp
from jax import lax
from jax.experimental import pallas as pl
from jax.experimental.pallas import tpu as pltpu


_BATCH_NORM_N_SWITCHES = 10

_VMEM_LIMIT_BYTES = 32 * 1024 * 1024     # safe on v5e/v6e (128 MiB) and v7x (64 MiB)
_PASS1_TILE_BYTES = 8 * 1024 * 1024      # 2 input buffers  -> ~16 MiB live
_PASS2_TILE_BYTES = 6 * 1024 * 1024      # 2 in + 2 out     -> ~24 MiB live
_FUSED_MAX_F32_BYTES = 4 * 1024 * 1024   # fused path: ~3x slab live in VMEM
_N_STAT_SHARDS = 2                       # v7x: 2 TensorCores; harmless elsewhere


def _cdiv(a, b):
    return -(-a // b)


def _round_up(a, b):
    return _cdiv(a, b) * b


def _pick_tile_rows(R, W, esize, budget):
    """Largest multiple-of-8 row count fitting the per-tile byte budget."""
    rows = (budget // (W * esize)) // 8 * 8
    if rows >= R:
        return max(R, 1)          # single full-extent block (full-dim exception)
    # TODO(synk): add a lane-axis grid dimension for extremely wide C*L slabs.
    return max(8, rows)


# ----------------------------------------------------------------------------
# Fused single-call path for small 2-D inputs (one HBM read + one write).
# ----------------------------------------------------------------------------
def _fused_bn_2d(x, weight, bias, eps):
    M, C = x.shape
    inv_count = 1.0 / float(M)

    def kernel(x_ref, w_ref, b_ref, y_ref, stats_ref):
        xv = x_ref[...].astype(jnp.float32)
        s = jnp.sum(xv, axis=0, keepdims=True)
        q = jnp.sum(xv * xv, axis=0, keepdims=True)
        mean = s * inv_count
        var = jnp.maximum(q * inv_count - mean * mean, 0.0)
        inv_std = lax.rsqrt(var + eps)
        scale = w_ref[...] * inv_std
        shift = b_ref[...] - mean * scale
        y_ref[...] = (xv * scale + shift).astype(y_ref.dtype)
        stats_ref[0:1, :] = mean
        stats_ref[1:2, :] = var

    y, stats = pl.pallas_call(
        kernel,
        out_shape=(jax.ShapeDtypeStruct((M, C), x.dtype),
                   jax.ShapeDtypeStruct((2, C), jnp.float32)),
        grid=(1,),
        in_specs=[pl.BlockSpec((M, C), lambda i: (0, 0)),
                  pl.BlockSpec((1, C), lambda i: (0, 0)),
                  pl.BlockSpec((1, C), lambda i: (0, 0))],
        out_specs=(pl.BlockSpec((M, C), lambda i: (0, 0)),
                   pl.BlockSpec((2, C), lambda i: (0, 0))),
        compiler_params=pltpu.CompilerParams(
            dimension_semantics=("arbitrary",),
            vmem_limit_bytes=_VMEM_LIMIT_BYTES),
    )(x, weight.astype(jnp.float32).reshape(1, C),
      bias.astype(jnp.float32).reshape(1, C))
    return y, stats[0], stats[1]


# ----------------------------------------------------------------------------
# Pass 1: per-column sum and sum-of-squares, sharded over (up to) 2 cores.
# ----------------------------------------------------------------------------
def _stats_pass(xf, tile_r, n_shards, tiles_per_shard, need_mask):
    R, W = xf.shape
    num_tiles = _cdiv(R, tile_r)

    def kernel(x_ref, acc_ref):
        i = pl.program_id(1)

        @pl.when(i == 0)
        def _():
            acc_ref[...] = jnp.zeros_like(acc_ref)

        x = x_ref[...].astype(jnp.float32)
        if need_mask:
            # Ragged last tile / clamped duplicate tiles: zero rows >= R so
            # they contribute nothing (we divide by the true count later).
            c = pl.program_id(0)
            row0 = (c * tiles_per_shard + i) * tile_r
            rows = row0 + lax.broadcasted_iota(jnp.int32, (tile_r, W), 0)
            x = jnp.where(rows < R, x, 0.0)

        acc_ref[0:1, :] += jnp.sum(x, axis=0, keepdims=True)        # sum(x)
        acc_ref[1:2, :] += jnp.sum(x * x, axis=0, keepdims=True)    # sum(x^2)

    def x_index(c, i):
        # Clamp so an odd tile count never issues a fully out-of-bounds DMA;
        # clamped duplicates are zeroed by the row mask above.
        return (jnp.minimum(c * tiles_per_shard + i, num_tiles - 1), 0)

    acc = pl.pallas_call(
        kernel,
        out_shape=jax.ShapeDtypeStruct((n_shards, 2, W), jnp.float32),
        grid=(n_shards, tiles_per_shard),
        in_specs=[pl.BlockSpec((tile_r, W), x_index)],
        out_specs=pl.BlockSpec((None, 2, W), lambda c, i: (c, 0, 0)),
        compiler_params=pltpu.CompilerParams(
            dimension_semantics=("parallel", "arbitrary"),
            vmem_limit_bytes=_VMEM_LIMIT_BYTES),
    )(xf)
    return jnp.sum(acc, axis=0)          # (2, W)


# ----------------------------------------------------------------------------
# Pass 2: elementwise normalize, y = x * scale + shift (scale/shift resident).
# ----------------------------------------------------------------------------
def _normalize_pass(xf, scale_w, shift_w, tile_r):
    R, W = xf.shape
    num_tiles = _cdiv(R, tile_r)

    def kernel(x_ref, scale_ref, shift_ref, y_ref):
        x = x_ref[...].astype(jnp.float32)
        y_ref[...] = (x * scale_ref[...] + shift_ref[...]).astype(y_ref.dtype)

    return pl.pallas_call(
        kernel,
        out_shape=jax.ShapeDtypeStruct((R, W), xf.dtype),
        grid=(num_tiles,),
        in_specs=[pl.BlockSpec((tile_r, W), lambda i: (i, 0)),
                  pl.BlockSpec((1, W), lambda i: (0, 0)),     # resident
                  pl.BlockSpec((1, W), lambda i: (0, 0))],    # resident
        out_specs=pl.BlockSpec((tile_r, W), lambda i: (i, 0)),
        compiler_params=pltpu.CompilerParams(
            dimension_semantics=("parallel",),
            vmem_limit_bytes=_VMEM_LIMIT_BYTES),
    )(xf, scale_w, shift_w)


# ----------------------------------------------------------------------------
# Training-mode BatchNorm1d on (M, C) or (N, C, L) inputs (jitted, shapes static).
# ----------------------------------------------------------------------------
@partial(jax.jit, static_argnames=("eps", "momentum"))
def _batch_norm_train(x, weight, bias, running_mean, running_var, *, eps, momentum):
    if x.ndim == 2:
        M0, C = x.shape
        L = 1
        x2 = x
    elif x.ndim == 3:
        M0, C, L = x.shape
        x2 = x.reshape(M0, C * L)            # contiguous reshape, no transpose
    else:
        raise ValueError("expected 2D or 3D input (got {}D)".format(x.ndim))

    width0 = C * L
    count = M0 * L                           # true samples per channel
    if count <= 1:
        raise ValueError(
            "Expected more than 1 value per channel when training, "
            f"got input size {tuple(x.shape)}")

    esize = jnp.dtype(x.dtype).itemsize

    if x.ndim == 2 and M0 * width0 * 4 <= _FUSED_MAX_F32_BYTES:
        # Small 2-D slab: single fused kernel (read once, write once).
        y, mean, var = _fused_bn_2d(x2, weight, bias, float(eps))
    else:
        # ---- Lane densification: make W a multiple of 128 where possible ----
        if width0 % 128 == 0:
            k = 1
        else:
            k_full = 128 // math.gcd(width0, 128)
            # Fold only when it costs nothing (rows already divisible) or when
            # the slab is narrower than one vreg row (fold is mandatory for
            # lane-dense stores); otherwise keep k=1 and avoid a full-slab pad.
            k = k_full if (M0 % k_full == 0 or width0 < 128) else 1
        M_pad = _round_up(M0, k)
        if M_pad != M0:
            # Narrow-channel case only: pad to a multiple of k (< 128 rows);
            # zero rows are stats-neutral since we divide by the true count.
            x2 = jnp.pad(x2, ((0, M_pad - M0), (0, 0)))
        R = M_pad // k
        W = k * width0
        xf = x2.reshape(R, W)

        # ---- Pass 1: column sums (2-core sharded on v7x) ----
        tile1 = _pick_tile_rows(R, W, esize, _PASS1_TILE_BYTES)
        num_tiles1 = _cdiv(R, tile1)
        n_shards = _N_STAT_SHARDS if num_tiles1 >= _N_STAT_SHARDS else 1
        tiles_per_shard = _cdiv(num_tiles1, n_shards)
        need_mask = (n_shards * tiles_per_shard * tile1) != R
        acc = _stats_pass(xf, tile1, n_shards, tiles_per_shard, need_mask)

        # Fold column partials back to per-channel: columns laid out as (k, C, L).
        s = acc[0].reshape(k, C, L).sum(axis=(0, 2))
        ss = acc[1].reshape(k, C, L).sum(axis=(0, 2))
        mean = s / count
        var = jnp.maximum(ss / count - mean * mean, 0.0)   # biased batch variance

        inv_std = lax.rsqrt(var + eps)
        scale = weight.astype(jnp.float32) * inv_std
        shift = bias.astype(jnp.float32) - mean * scale
        scale_w = jnp.tile(jnp.repeat(scale, L), k).reshape(1, W)
        shift_w = jnp.tile(jnp.repeat(shift, L), k).reshape(1, W)

        # ---- Pass 2: normalize ----
        tile2 = _pick_tile_rows(R, W, esize, _PASS2_TILE_BYTES)
        yf = _normalize_pass(xf, scale_w, shift_w, tile2)
        y2 = yf.reshape(M_pad, width0)[:M0]
        y = y2 if x.ndim == 2 else y2.reshape(M0, C, L)

    # Running-stats update (torch.nn.BatchNorm1d: unbiased variance, momentum).
    unbiased_var = var * (count / (count - 1))
    new_rm = (1.0 - momentum) * running_mean + momentum * mean
    new_rv = (1.0 - momentum) * running_var + momentum * unbiased_var
    return y, new_rm, new_rv


# ----------------------------------------------------------------------------
# Module-level wrapper mirroring the PyTorch BatchNormSwitch.
# ----------------------------------------------------------------------------
class BatchNormSwitch:
    """JAX/Pallas re-implementation of the PyTorch BatchNormSwitch module."""

    _switch_value = None  # class-level switch, mirrors __batch_norm_switch

    def __init__(self, num_features, eps=1e-5, momentum=0.1, key=None):
        self.num_features = num_features
        self.eps = float(eps)
        self.momentum = float(momentum)

        if key is None:
            key = jax.random.PRNGKey(0)
        kw, kb = jax.random.split(key)
        # Shared affine parameters (switches 1..9 alias switch 0's weight/bias):
        # default BN init (1, 0) plus a small deterministic perturbation.
        self.weight = jnp.ones((num_features,), jnp.float32) \
            + 0.1 * jax.random.normal(kw, (num_features,), jnp.float32)
        self.bias = jnp.zeros((num_features,), jnp.float32) \
            + 0.1 * jax.random.normal(kb, (num_features,), jnp.float32)

        # Independent running statistics per switch.
        self.running_means = [jnp.zeros((num_features,), jnp.float32)
                              for _ in range(_BATCH_NORM_N_SWITCHES)]
        self.running_vars = [jnp.ones((num_features,), jnp.float32)
                             for _ in range(_BATCH_NORM_N_SWITCHES)]

    def __call__(self, x):
        switch = BatchNormSwitch._switch_value
        if switch not in list(range(_BATCH_NORM_N_SWITCHES)):
            if switch is None:
                raise RuntimeError(
                    "You cannot use a module using the batchnorm switch without "
                    "explicitly setting the value of the switch. Wrap the call in "
                    "'with BatchNormSwitch.Switch(value):'.")
            raise RuntimeError(
                f"Batch norm switch can only be between 0 and "
                f"{_BATCH_NORM_N_SWITCHES - 1} inclusive, but you entered {switch}.")

        y, nrm, nrv = _batch_norm_train(
            x, self.weight, self.bias,
            self.running_means[switch], self.running_vars[switch],
            eps=self.eps, momentum=self.momentum)

        # TODO(synk): host-side Python state (class-level switch + mutable
        # running stats) is not jit/thread safe, same as the original module.
        self.running_means[switch] = nrm
        self.running_vars[switch] = nrv
        return y

    class Switch:
        def __init__(self, value):
            self.value = value

        def __enter__(self):
            if BatchNormSwitch._switch_value is not None:
                raise RuntimeError(
                    f"The switch is already fixed to the value "
                    f"{BatchNormSwitch._switch_value}. Do not nest Switch contexts.")
            BatchNormSwitch._switch_value = self.value

        def __exit__(self, exc_type, exc_val, exc_tb):
            BatchNormSwitch._switch_value = None


def _reference_bn(x, weight, bias, eps):
    """Pure-JAX training-mode BatchNorm1d reference for checking."""
    if x.ndim == 2:
        axes = (0,)
        shape = (1, -1)
    else:
        axes = (0, 2)
        shape = (1, -1, 1)
    mean = jnp.mean(x, axis=axes, keepdims=True)
    var = jnp.mean((x - mean) ** 2, axis=axes, keepdims=True)
    return (x - mean) / jnp.sqrt(var + eps) * weight.reshape(shape) + bias.reshape(shape)


if __name__ == "__main__":
    key = jax.random.PRNGKey(0)
    k_param, k_x3, k_x2 = jax.random.split(key, 3)

    num_features = 32
    module = BatchNormSwitch(num_features, key=k_param)

    # --- (N, C, L) input, PyTorch BatchNorm1d layout (two-pass path) ---
    x3 = jax.random.normal(k_x3, (4, num_features, 16), jnp.float32)
    with BatchNormSwitch.Switch(3):
        y3 = module(x3)
    y3 = jax.block_until_ready(y3)
    y3_ref = _reference_bn(x3, module.weight, module.bias, module.eps)
    assert y3.shape == x3.shape
    assert jnp.allclose(y3, y3_ref, atol=1e-4, rtol=1e-4), \
        float(jnp.max(jnp.abs(y3 - y3_ref)))

    # Running stats of switch 3 updated (unbiased var, momentum 0.1).
    m3 = jnp.mean(x3, axis=(0, 2))
    v3 = jnp.var(x3, axis=(0, 2), ddof=1)
    assert jnp.allclose(module.running_means[3], 0.1 * m3, atol=1e-4, rtol=1e-4)
    assert jnp.allclose(module.running_vars[3], 0.9 + 0.1 * v3, atol=1e-4, rtol=1e-4)
    # Other switches untouched.
    assert jnp.allclose(module.running_means[0], 0.0)
    assert jnp.allclose(module.running_vars[0], 1.0)

    # --- (N, C) input exercising the fused single-kernel path ---
    x2 = jax.random.normal(k_x2, (16, num_features), jnp.float32)
    with BatchNormSwitch.Switch(0):
        y2 = module(x2)
    y2 = jax.block_until_ready(y2)
    y2_ref = _reference_bn(x2, module.weight, module.bias, module.eps)
    assert y2.shape == x2.shape
    assert jnp.allclose(y2, y2_ref, atol=1e-4, rtol=1e-4), \
        float(jnp.max(jnp.abs(y2 - y2_ref)))

    print("KERNEL_OK")
</pallas_src>

<mosaic_0001>
module attributes {stable_mosaic.version = 11 : i64} {
  func.func @kernel(%arg0: i32, %arg1: i32, %arg2: memref<4x512xf32, #tpu.memory_space<vmem>>, %arg3: memref<1x2x512xf32, #tpu.memory_space<vmem>>) attributes {dimension_semantics = [#tpu.dimension_semantics<parallel>, #tpu.dimension_semantics<arbitrary>], iteration_bounds = array<i64: 1, 1>, scalar_prefetch = 0 : i64, scratch_operands = 0 : i64, tpu.core_type = #tpu.core_type<tc>, window_params = [{transform_indices = @transform_0, window_bounds = array<i64: 4, 512>}, {transform_indices = @transform_1, window_bounds = array<i64: 1, 2, 512>}]} {
    %c0_i32 = arith.constant 0 : i32
    %0 = arith.cmpi eq, %arg1, %c0_i32 : i32
    %1 = arith.extui %0 : i1 to i32
    %c0_i32_0 = arith.constant 0 : i32
    %2 = arith.cmpi ne, %1, %c0_i32_0 : i32
    scf.if %2 {
      %cst_14 = arith.constant 0.000000e+00 : f32
      %21 = vector.broadcast %cst_14 : f32 to vector<2x512xf32>
      %c0_15 = arith.constant 0 : index
      %c0_16 = arith.constant 0 : index
      %c0_17 = arith.constant 0 : index
      %22 = vector.load %arg3[%c0_15, %c0_16, %c0_17] : memref<1x2x512xf32, #tpu.memory_space<vmem>>, vector<1x2x512xf32>
      %23 = vector.shape_cast %22 : vector<1x2x512xf32> to vector<2x512xf32>
      %24 = vector.shape_cast %21 : vector<2x512xf32> to vector<1x2x512xf32>
      tpu.vector_store %arg3[%c0_15, %c0_16, %c0_17], %24 {strides = array<i32>} : memref<1x2x512xf32, #tpu.memory_space<vmem>>, vector<1x2x512xf32>,
    } else {
    }
    %c0 = arith.constant 0 : index
    %c0_1 = arith.constant 0 : index
    %3 = vector.load %arg2[%c0, %c0_1] : memref<4x512xf32, #tpu.memory_space<vmem>>, vector<4x512xf32>
    %c0_2 = arith.constant 0 : index
    %c0_3 = arith.constant 0 : index
    %c0_4 = arith.constant 0 : index
    %4 = vector.load %arg3[%c0_2, %c0_3, %c0_4] : memref<1x2x512xf32, #tpu.memory_space<vmem>>, vector<1x1x512xf32>
    %5 = vector.shape_cast %4 : vector<1x1x512xf32> to vector<1x512xf32>
    %cst = arith.constant dense<0.000000e+00> : vector<512xf32>
    %6 = vector.multi_reduction <add>, %3, %cst [0] : vector<4x512xf32> to vector<512xf32>
    %7 = vector.shape_cast %6 : vector<512xf32> to vector<1x512xf32>
    %8 = arith.addf %5, %7 : vector<1x512xf32>
    %c0_5 = arith.constant 0 : index
    %c0_6 = arith.constant 0 : index
    %c0_7 = arith.constant 0 : index
    %9 = vector.load %arg3[%c0_5, %c0_6, %c0_7] : memref<1x2x512xf32, #tpu.memory_space<vmem>>, vector<1x1x512xf32>
    %10 = vector.shape_cast %9 : vector<1x1x512xf32> to vector<1x512xf32>
    %11 = vector.shape_cast %8 : vector<1x512xf32> to vector<1x1x512xf32>
    tpu.vector_store %arg3[%c0_5, %c0_6, %c0_7], %11 {strides = array<i32>} : memref<1x2x512xf32, #tpu.memory_space<vmem>>, vector<1x1x512xf32>,
    %c0_8 = arith.constant 0 : index
    %c1 = arith.constant 1 : index
    %c0_9 = arith.constant 0 : index
    %12 = vector.load %arg3[%c0_8, %c1, %c0_9] : memref<1x2x512xf32, #tpu.memory_space<vmem>>, vector<1x1x512xf32>
    %13 = vector.shape_cast %12 : vector<1x1x512xf32> to vector<1x512xf32>
    %14 = arith.mulf %3, %3 : vector<4x512xf32>
    %cst_10 = arith.constant dense<0.000000e+00> : vector<512xf32>
    %15 = vector.multi_reduction <add>, %14, %cst_10 [0] : vector<4x512xf32> to vector<512xf32>
    %16 = vector.shape_cast %15 : vector<512xf32> to vector<1x512xf32>
    %17 = arith.addf %13, %16 : vector<1x512xf32>
    %c0_11 = arith.constant 0 : index
    %c1_12 = arith.constant 1 : index
    %c0_13 = arith.constant 0 : index
    %18 = vector.load %arg3[%c0_11, %c1_12, %c0_13] : memref<1x2x512xf32, #tpu.memory_space<vmem>>, vector<1x1x512xf32>
    %19 = vector.shape_cast %18 : vector<1x1x512xf32> to vector<1x512xf32>
    %20 = vector.shape_cast %17 : vector<1x512xf32> to vector<1x1x512xf32>
    tpu.vector_store %arg3[%c0_11, %c1_12, %c0_13], %20 {strides = array<i32>} : memref<1x2x512xf32, #tpu.memory_space<vmem>>, vector<1x1x512xf32>,
    return
  }
  func.func @transform_0(%arg0: i32, %arg1: i32) -> (i32, i32) {
    %c1_i32 = arith.constant 1 : i32
    %0 = arith.muli %arg0, %c1_i32 : i32
    %1 = arith.addi %0, %arg1 : i32
    %c0_i32 = arith.constant 0 : i32
    %2 = arith.minsi %1, %c0_i32 : i32
    %c0_i32_0 = arith.constant 0 : i32
    %c0_i32_1 = arith.constant 0 : i32
    return %2, %c0_i32_0 : i32, i32
  }
  func.func @transform_1(%arg0: i32, %arg1: i32) -> (i32, i32, i32) {
    %c0_i32 = arith.constant 0 : i32
    %c0_i32_0 = arith.constant 0 : i32
    %c0_i32_1 = arith.constant 0 : i32
    return %arg0, %c0_i32, %c0_i32_0 : i32, i32, i32
  }
}

module attributes {stable_mosaic.version = 11 : i64} {
  func.func @kernel(%arg0: i32, %arg1: memref<4x512xf32, #tpu.memory_space<vmem>>, %arg2: memref<1x512xf32, #tpu.memory_space<vmem>>, %arg3: memref<1x512xf32, #tpu.memory_space<vmem>>, %arg4: memref<4x512xf32, #tpu.memory_space<vmem>>) attributes {dimension_semantics = [#tpu.dimension_semantics<parallel>], iteration_bounds = array<i64: 1>, scalar_prefetch = 0 : i64, scratch_operands = 0 : i64, tpu.core_type = #tpu.core_type<tc>, window_params = [{transform_indices = @transform_0, window_bounds = array<i64: 4, 512>}, {pipeline_mode = #tpu.pipeline_mode<synchronous>, transform_indices = @transform_1, window_bounds = array<i64: 1, 512>}, {pipeline_mode = #tpu.pipeline_mode<synchronous>, transform_indices = @transform_2, window_bounds = array<i64: 1, 512>}, {transform_indices = @transform_3, window_bounds = array<i64: 4, 512>}]} {
    %c0 = arith.constant 0 : index
    %c0_0 = arith.constant 0 : index
    %0 = vector.load %arg1[%c0, %c0_0] : memref<4x512xf32, #tpu.memory_space<vmem>>, vector<4x512xf32>
    %c0_1 = arith.constant 0 : index
    %c0_2 = arith.constant 0 : index
    %1 = vector.load %arg2[%c0_1, %c0_2] : memref<1x512xf32, #tpu.memory_space<vmem>>, vector<1x512xf32>
    %2 = vector.broadcast %1 : vector<1x512xf32> to vector<4x512xf32>
    %3 = arith.mulf %0, %2 : vector<4x512xf32>
    %c0_3 = arith.constant 0 : index
    %c0_4 = arith.constant 0 : index
    %4 = vector.load %arg3[%c0_3, %c0_4] : memref<1x512xf32, #tpu.memory_space<vmem>>, vector<1x512xf32>
    %5 = vector.broadcast %4 : vector<1x512xf32> to vector<4x512xf32>
    %6 = arith.addf %3, %5 : vector<4x512xf32>
    %c0_5 = arith.constant 0 : index
    %c0_6 = arith.constant 0 : index
    %7 = vector.load %arg4[%c0_5, %c0_6] : memref<4x512xf32, #tpu.memory_space<vmem>>, vector<4x512xf32>
    tpu.vector_store %arg4[%c0_5, %c0_6], %6 {strides = array<i32>} : memref<4x512xf32, #tpu.memory_space<vmem>>, vector<4x512xf32>,
    return
  }
  func.func @transform_0(%arg0: i32) -> (i32, i32) {
    %c0_i32 = arith.constant 0 : i32
    %c0_i32_0 = arith.constant 0 : i32
    return %arg0, %c0_i32 : i32, i32
  }
  func.func @transform_1(%arg0: i32) -> (i32, i32) {
    %c0_i32 = arith.constant 0 : i32
    %c0_i32_0 = arith.constant 0 : i32
    %c0_i32_1 = arith.constant 0 : i32
    return %c0_i32, %c0_i32_0 : i32, i32
  }
  func.func @transform_2(%arg0: i32) -> (i32, i32) {
    %c0_i32 = arith.constant 0 : i32
    %c0_i32_0 = arith.constant 0 : i32
    %c0_i32_1 = arith.constant 0 : i32
    return %c0_i32, %c0_i32_0 : i32, i32
  }
  func.func @transform_3(%arg0: i32) -> (i32, i32) {
    %c0_i32 = arith.constant 0 : i32
    %c0_i32_0 = arith.constant 0 : i32
    return %arg0, %c0_i32 : i32, i32
  }
}

</mosaic_0001>

<bundles_post_ra>
// kernel: squeeze.2
= control target key start
LH: loop header
LB: loop body
LE: loop exit
PB: predicated region body
PF: predicated region fallthrough
CT: control target
= control target key end

     0   :  { %s66_s8 = smov 80   ;;  %vm7_vm0 = vcmask 130048   ;;  %s67_s11 = smov 96   ;;  %s117_s0 = inlined_call_operand.vmem [shape: f32[512], index: 0, kind: input, shape index: {}]   ;;  %s118_s1 = inlined_call_operand.vmem [shape: f32[32,16], index: 1, kind: output, shape index: {}]  }
   0x1   :  { %v4_v0 = vld [vmem:[%s117_s0] sm:$0xf]  ;;  %s65_s0 = smov 112   ;;  %s68_s12 = smov 64  }
   0x2   :  { %5 = vst [vmem:[#allocation0] sm:$0xf] %v4_v0  ;;  %s69_s13 = smov 48   ;;  %s70_s14 = smov 32  }
   0x3   :  { %s71_s15 = smov 16  }
   0x9   :  { %v9_v1 = vld [vmem:[#allocation0] sm:$0xf]  }
   0xa   :  { %v21_v2 = vld [vmem:[#allocation0] sm:$0xf]   ;;  %10 = vrot.lane.b32.xlu0 %v9_v1, %s65_s0 }
   0xb   :  { %22 = vrot.lane.b32.xlu1 %v21_v2, %s66_s8  ;;  %v15_v3 = vld [vmem:[#allocation0] sm:$0xf]  }
   0xc   :  { %v27_v4 = vld [vmem:[#allocation0] sm:$0xf]  }
   0xd   :  { %v6_v5 = vld [vmem:[#allocation0] sm:$0xf]  }
   0xe   :  { %8 = vst.msk [vmem:[%s118_s1] ss:$8 sm:$0xf] %vm7_vm0, %v6_v5   ;;  %16 = vrot.lane.b32.xlu0 %v15_v3, %s67_s11  ;;  %v33_v6 = vld [vmem:[#allocation0] sm:$0xf]  }
   0xf   :  { %28 = vrot.lane.b32.xlu1 %v27_v4, %s68_s12  ;;  %v39_v7 = vld [vmem:[#allocation0] sm:$0xf]  }
  0x10   :  { %v45_v8 = vld [vmem:[#allocation0] sm:$0xf]  }
  0x12   :  { %34 = vrot.lane.b32.xlu0 %v33_v6, %s69_s13 }
  0x13   :  { %40 = vrot.lane.b32.xlu1 %v39_v7, %s70_s14 }
  0x16   :  { %46 = vrot.lane.b32.xlu0 %v45_v8, %s71_s15 }
  0x7c   :  { %v11_v9 = vpop.permute.xlu0 %10  }
  0x7d   :  { %v23_v10 = vpop.permute.xlu1 %22   ;;  %51 = vst.msk [vmem:[%s118_s1 + $0x1] ss:$8 sm:$0xf] %vm7_vm0, %v11_v9  }
  0x7e   :  { %53 = vst.msk [vmem:[%s118_s1 + $0x3] ss:$8 sm:$0xf] %vm7_vm0, %v23_v10  }
  0x80   :  { %v17_v11 = vpop.permute.xlu0 %16  }
  0x81   :  { %v29_v12 = vpop.permute.xlu1 %28   ;;  %52 = vst.msk [vmem:[%s118_s1 + $0x2] ss:$8 sm:$0xf] %vm7_vm0, %v17_v11  }
  0x82   :  { %54 = vst.msk [vmem:[%s118_s1 + $0x4] ss:$8 sm:$0xf] %vm7_vm0, %v29_v12  }
  0x84   :  { %v35_v13 = vpop.permute.xlu0 %34  }
  0x85   :  { %v41_v14 = vpop.permute.xlu1 %40   ;;  %55 = vst.msk [vmem:[%s118_s1 + $0x5] ss:$8 sm:$0xf] %vm7_vm0, %v35_v13  }
  0x86   :  { %56 = vst.msk [vmem:[%s118_s1 + $0x6] ss:$8 sm:$0xf] %vm7_vm0, %v41_v14  }
  0x88   :  { %v47_v15 = vpop.permute.xlu0 %46  }
  0x89   :  { %57 = vst.msk [vmem:[%s118_s1 + $0x7] ss:$8 sm:$0xf] %vm7_vm0, %v47_v15  }

// kernel: _batch_norm_train.2
= control target key start
LH: loop header
LB: loop body
LE: loop exit
PB: predicated region body
PF: predicated region fallthrough
CT: control target
= control target key end

     0   :  { %vm52_vm0 = vcmask 1043456   ;;  %v201_v0 = vmov 0.0   ;;  %v90_v9 = vlaneseq  ;;  %v202_v12 = vmov 1966171168   ;;  %s244_s1 = inlined_call_operand.vmem [shape: f32[1,2,512], index: 1, kind: output, shape index: {}]   ;;  %s245_s0 = inlined_call_operand.vmem [shape: f32[4,512], index: 0, kind: input, shape index: {}]  }
   0x1   :  { %42 = vst [vmem:[%s244_s1] sm:$0xff] %v201_v0  ;;  %v43_v1 = vld [vmem:[%s245_s0] sm:$0xff]  ;;  %v44_v2 = vld [vmem:[%s245_s0 + $0x8] sm:$0xff]  ;;  %v88_v13 = vunpack.c.l.s4 %v202_v12 }
   0x2   :  { %v48_v3 = vcombine.high %v43_v1, %v43_v1  ;;  %v49_v4 = vcombine.high %v44_v2, %v44_v2  ;;  %v53_v5 = vsel %vm52_vm0, %v43_v1, 0.0  ;;  %v67_v6 = vsel %vm52_vm0, %v44_v2, 0.0 }
   0x3   :  { %v54_v7 = vrot.slane %v53_v5, 4  ;;  %v68_v8 = vrot.slane %v67_v6, 4  ;;  %v118_v14 = vmul.f32 %v43_v1, %v43_v1  ;;  %v119_v19 = vmul.f32 %v44_v2, %v44_v2 }
   0x4   :  { %v60_v10 = vsel %vm52_vm0, %v48_v3, 0.0  ;;  %v74_v11 = vsel %vm52_vm0, %v49_v4, 0.0  ;;  %v89_v26 = vunpack.c.0.s8 %v88_v13  ;;  %v91_v27 = vshrl.u32 %v90_v9, 7 }
   0x5   :  { %v55_v15 = vadd.f32 %v54_v7, %v53_v5  ;;  %v61_v16 = vrot.slane %v60_v10, 4  ;;  %v69_v17 = vadd.f32 %v68_v8, %v67_v6  ;;  %v75_v18 = vrot.slane %v74_v11, 4 }
   0x6   :  { %v122_v20 = vcombine.high %v118_v14, %v118_v14  ;;  %v126_v21 = vsel %vm52_vm0, %v118_v14, 0.0  ;;  %v123_v28 = vcombine.high %v119_v19, %v119_v19  ;;  %v140_v35 = vsel %vm52_vm0, %v119_v19, 0.0 }
   0x7   :  { %v56_v22 = vrot.slane %v55_v15, 2  ;;  %v62_v23 = vadd.f32 %v61_v16, %v60_v10  ;;  %v70_v24 = vrot.slane %v69_v17, 2  ;;  %v76_v25 = vadd.f32 %v75_v18, %v74_v11 }
   0x8   :  { %v127_v33 = vrot.slane %v126_v21, 4  ;;  %v133_v34 = vsel %vm52_vm0, %v122_v20, 0.0  ;;  %v147_v36 = vsel %vm52_vm0, %v123_v28, 0.0  ;;  %v141_v43 = vrot.slane %v140_v35, 4 }
   0x9   :  { %v57_v29 = vadd.f32 %v56_v22, %v55_v15  ;;  %v63_v30 = vrot.slane %v62_v23, 2  ;;  %v71_v31 = vadd.f32 %v70_v24, %v69_v17  ;;  %v77_v32 = vrot.slane %v76_v25, 2  ;;  %v45_v10 = vld [vmem:[%s244_s1] ss:$2 sm:$0xf] }
   0xa   :  { %v128_v41 = vadd.f32 %v127_v33, %v126_v21  ;;  %v134_v42 = vrot.slane %v133_v34, 4  ;;  %v148_v44 = vrot.slane %v147_v36, 4  ;;  %v142_v51 = vadd.f32 %v141_v43, %v140_v35  ;;  %v195_v21 = vld [vmem:[%s244_s1 + $0x1] ss:$2 sm:$0xf] }
   0xb   :  { %v58_v37 = vrot.slane %v57_v29, 1  ;;  %v64_v38 = vadd.f32 %v63_v30, %v62_v23  ;;  %v72_v39 = vrot.slane %v71_v31, 1  ;;  %v78_v40 = vadd.f32 %v77_v32, %v76_v25 }
   0xc   :  { %v129_v49 = vrot.slane %v128_v41, 2  ;;  %v135_v50 = vadd.f32 %v134_v42, %v133_v34  ;;  %v149_v52 = vadd.f32 %v148_v44, %v147_v36  ;;  %v92_v55 = vsub.s32 %v89_v26, %v91_v27 }
   0xd   :  { %v59_v45 = vadd.f32 %v58_v37, %v57_v29  ;;  %v65_v46 = vrot.slane %v64_v38, 1  ;;  %v73_v47 = vadd.f32 %v72_v39, %v71_v31  ;;  %v79_v48 = vrot.slane %v78_v40, 1 }
   0xe   :  { %v130_v56 = vadd.f32 %v129_v49, %v128_v41  ;;  %v136_v57 = vrot.slane %v135_v50, 2  ;;  %v143_v58 = vrot.slane %v142_v51, 2  ;;  %v150_v59 = vrot.slane %v149_v52, 2 }
   0xf   :  { %v66_v53 = vadd.f32 %v65_v46, %v64_v38  ;;  %v80_v54 = vadd.f32 %v79_v48, %v78_v40  ;;  %vm113_vm1 = vcmp.lt.s32.totalorder %v90_v9, 512 }
  0x10   :  { %v131_v62 = vrot.slane %v130_v56, 1  ;;  %v137_v63 = vadd.f32 %v136_v57, %v135_v50  ;;  %v144_v0 = vadd.f32 %v143_v58, %v142_v51  ;;  %v151_v1 = vadd.f32 %v150_v59, %v149_v52 }
  0x11   :  { %v85_v60 = vcombine.low %v59_v45, %v66_v53  ;;  %v86_v61 = vcombine.low %v73_v47, %v80_v54 }
  0x12   :  { %v132_v4 = vadd.f32 %v131_v62, %v130_v56  ;;  %v138_v5 = vrot.slane %v137_v63, 1  ;;  %v145_v6 = vrot.slane %v144_v0, 1  ;;  %v152_v7 = vrot.slane %v151_v1, 1 }
  0x13   :  { %v93_v2 = vrot.slane %v85_v60, %v92_v55  ;;  %v100_v3 = vrot.slane %v86_v61, %v92_v55 }
  0x14   :  { %v139_v11 = vadd.f32 %v138_v5, %v137_v63  ;;  %v146_v12 = vadd.f32 %v145_v6, %v144_v0  ;;  %v153_v13 = vadd.f32 %v152_v7, %v151_v1 }
  0x15   :  { %v101_v8 = vcombine.low %v93_v2, %v100_v3 }
  0x16   :  { %v158_v15 = vcombine.low %v132_v4, %v139_v11  ;;  %v159_v16 = vcombine.low %v146_v12, %v153_v13 }
  0x17   :  { %v108_v14 = vrot.slane %v101_v8, %v92_v55 }
  0x18   :  { %v166_v18 = vrot.slane %v158_v15, %v92_v55  ;;  %v173_v19 = vrot.slane %v159_v16, %v92_v55 }
  0x19   :  { %v110_v17 = vadd.f32 %v108_v14, %v45_v10 }
  0x1a   :  { %v174_v20 = vcombine.low %v166_v18, %v173_v19 }
  0x1b   :  { %115 = vst.msk [vmem:[%s244_s1] ss:$2 sm:$0xf] %vm113_vm1, %v110_v17 }
  0x1c   :  { %v181_v22 = vrot.slane %v174_v20, %v92_v55 }
  0x1e   :  { %v183_v23 = vadd.f32 %v195_v21, %v181_v22 }
  0x20   :  { %196 = vst.msk [vmem:[%s244_s1 + $0x1] ss:$2 sm:$0xf] %vm113_vm1, %v183_v23 }

// kernel: _batch_norm_train.3
= control target key start
LH: loop header
LB: loop body
LE: loop exit
PB: predicated region body
PF: predicated region fallthrough
CT: control target
= control target key end

     0   :  { %v18_v0 = vlaneseq  ;;  %s108_s1 = inlined_call_operand.vmem [shape: f32[1,512], index: 1, kind: input, shape index: {}]   ;;  %s109_s2 = inlined_call_operand.vmem [shape: f32[1,512], index: 2, kind: input, shape index: {}]   ;;  %s110_s0 = inlined_call_operand.vmem [shape: f32[4,512], index: 0, kind: input, shape index: {}]   ;;  %s111_s3 = inlined_call_operand.vmem [shape: f32[4,512], index: 3, kind: output, shape index: {}]  }
   0x1   :  { %v16_v2 = vld [vmem:[%s108_s1] sm:$0xf]  ;;  %v15_v19 = vld [vmem:[%s110_s0 + $0x8] sm:$0xff] }
   0x2   :  { %v19_v1 = vshrl.u32 %v18_v0, 7  ;;  %v40_v3 = vld [vmem:[%s109_s2] sm:$0xf] }
   0x3   :  { %v14_v12 = vld [vmem:[%s110_s0] sm:$0xff] }
   0x4   :  { %v20_v4 = vsub.s32 0, %v19_v1  ;;  %v24_v5 = vsub.s32 1, %v19_v1  ;;  %v28_v6 = vsub.s32 2, %v19_v1  ;;  %v32_v7 = vsub.s32 3, %v19_v1 }
   0x6   :  { %v21_v8 = vrot.slane %v16_v2, %v20_v4  ;;  %v25_v9 = vrot.slane %v16_v2, %v24_v5  ;;  %v45_v10 = vrot.slane %v40_v3, %v20_v4  ;;  %v49_v11 = vrot.slane %v40_v3, %v24_v5 }
   0x7   :  { %v29_v13 = vrot.slane %v16_v2, %v28_v6  ;;  %v33_v14 = vrot.slane %v16_v2, %v32_v7  ;;  %v53_v15 = vrot.slane %v40_v3, %v28_v6  ;;  %v57_v16 = vrot.slane %v40_v3, %v32_v7 }
   0x8   :  { %v34_v17 = vcombine.low %v21_v8, %v25_v9  ;;  %v58_v18 = vcombine.low %v45_v10, %v49_v11 }
   0x9   :  { %v35_v20 = vcombine.low %v29_v13, %v33_v14  ;;  %v59_v21 = vcombine.low %v53_v15, %v57_v16 }
   0xa   :  { %v38_v22 = vmul.f32 %v34_v17, %v14_v12 }
   0xb   :  { %v39_v23 = vmul.f32 %v35_v20, %v15_v19 }
   0xc   :  { %v62_v24 = vadd.f32 %v58_v18, %v38_v22 }
   0xd   :  { %v63_v25 = vadd.f32 %v59_v21, %v39_v23 }
   0xe   :  { %64 = vst [vmem:[%s111_s3] sm:$0xff] %v62_v24 }
   0xf   :  { %65 = vst [vmem:[%s111_s3 + $0x8] sm:$0xff] %v63_v25 }

</bundles_post_ra>
